<compile_context>
chip_gen: v7x
topology: tpu7x:2x2x1
jax: 0.10.0
libtpu: 0.0.40
codegen_flags: <defaults>
</compile_context>

<pallas_src>
import math
import functools

import jax
import jax.numpy as jnp
from jax.experimental import pallas as pl
from jax.experimental.pallas import tpu as pltpu

MIN_NORM = 1e-15
MIN_NORM_SQ = 1e-30          # MIN_NORM**2, still a normal f32
EPS_F32 = 4e-3               # PoincareBall.eps[torch.float32]
TANH_CLAMP = 15.0
ARTANH_EPS = 1e-7            # f32-appropriate clamp (1e-15 rounds away in f32)


# ----------------------------------------------------------------------------
# shared elementwise helpers (valid both inside the kernel and in plain JAX)
# ----------------------------------------------------------------------------
def _artanh(v):
    v = jnp.clip(v, -1.0 + ARTANH_EPS, 1.0 - ARTANH_EPS)
    return 0.5 * (jnp.log(1.0 + v) - jnp.log(1.0 - v))


def _tanh(v):
    return jnp.tanh(jnp.clip(v, -TANH_CLAMP, TANH_CLAMP))


# ----------------------------------------------------------------------------
# plain-JAX reference manifold ops (hoisted bias transform + __main__ check)
# ----------------------------------------------------------------------------
def _norm_ref(v):
    return jnp.maximum(jnp.sqrt(jnp.sum(v * v, axis=-1, keepdims=True)), MIN_NORM)


def _proj_ref(v, c):
    norm = _norm_ref(v)
    maxnorm = (1.0 - EPS_F32) / jnp.sqrt(c)
    return jnp.where(norm > maxnorm, v / norm * maxnorm, v)


def _expmap0_ref(u, c):
    sqrt_c = jnp.sqrt(c)
    u_norm = _norm_ref(u)
    return _tanh(sqrt_c * u_norm) * u / (sqrt_c * u_norm)


def _logmap0_ref(p, c):
    sqrt_c = jnp.sqrt(c)
    p_norm = _norm_ref(p)
    return (1.0 / sqrt_c) * _artanh(sqrt_c * p_norm) / p_norm * p


def _mobius_add_ref(x, y, c):
    x2 = jnp.sum(x * x, axis=-1, keepdims=True)
    y2 = jnp.sum(y * y, axis=-1, keepdims=True)
    xy = jnp.sum(x * y, axis=-1, keepdims=True)
    num = (1.0 + 2.0 * c * xy + c * y2) * x + (1.0 - c * x2) * y
    denom = jnp.maximum(1.0 + 2.0 * c * xy + c * c * x2 * y2, MIN_NORM)
    return num / denom


def hnn_layer_ref(x, weight, bias, c):
    """Pure-JAX reference of HNNLayer.forward (PyTorch semantics)."""
    c = jnp.float32(c)
    sqrt_c = jnp.sqrt(c)
    x_norm = _norm_ref(x)
    mx = x @ weight.T
    mx_norm = _norm_ref(mx)
    res_c = _tanh(mx_norm / x_norm * _artanh(sqrt_c * x_norm)) * mx / (mx_norm * sqrt_c)
    res = jnp.where(jnp.all(mx == 0.0, axis=-1, keepdims=True), 0.0, res_c)
    res = _proj_ref(res, c)
    hyp_bias = _proj_ref(_expmap0_ref(bias.reshape(1, -1), c), c)
    res = _proj_ref(_mobius_add_ref(res, hyp_bias, c), c)
    xt = jnp.maximum(_logmap0_ref(res, c), 0.0)          # ReLU, proj_tan0 = identity
    return _proj_ref(_expmap0_ref(xt, c), c)


# ----------------------------------------------------------------------------
# Pallas kernel: one row-tile of HNNLayer.forward
# ----------------------------------------------------------------------------
def hnn_layer_kernel(x_ref, w_ref, hb_ref, cy2_ref, o_ref, *, c):
    """
    x_ref   : (TM, Din_p)     f32 points on the Poincare ball (lane-padded)
    w_ref   : (Dout_p, Din_p) weight, bf16 (or f32), untransposed
    hb_ref  : (1, Dout_p)     f32 precomputed hyperbolic bias = proj(expmap0(b))
    cy2_ref : (1,) f32 SMEM   precomputed c * ||hyp_bias||^2
    o_ref   : (TM, Dout_p)    f32 output points on the ball
    """
    c = float(c)
    sqrt_c = math.sqrt(c)
    inv_sqrt_c = 1.0 / sqrt_c
    maxnorm = (1.0 - EPS_F32) / sqrt_c
    inv_maxnorm = 1.0 / maxnorm

    x = x_ref[...]                         # f32
    w = w_ref[...]                         # bf16 / f32
    hb = hb_ref[...]                       # (1, Dout_p) f32
    cy2 = cy2_ref[0]                       # scalar f32: c * ||hyp_bias||^2

    # ---------------- HypLinear: mobius_matvec(W, x, c) ----------------------
    x_sq = jnp.sum(x * x, axis=-1, keepdims=True)
    inv_x_norm = jax.lax.rsqrt(jnp.maximum(x_sq, MIN_NORM_SQ))
    x_norm = x_sq * inv_x_norm

    # mx = x @ W^T : contract x dim 1 with w dim 1 (no HBM-side transpose).
    mx = jax.lax.dot_general(x.astype(w.dtype), w,
                             (((1,), (1,)), ((), ())),
                             preferred_element_type=jnp.float32)   # (TM, Dout_p)

    mx_sq = jnp.sum(mx * mx, axis=-1, keepdims=True)
    inv_mx_norm = jax.lax.rsqrt(jnp.maximum(mx_sq, MIN_NORM_SQ))
    mx_norm = mx_sq * inv_mx_norm

    # t >= 0; rows with W x == 0 have mx_norm == 0 -> t == 0 -> res == origin,
    # so no explicit zero-row select is needed.
    t = _tanh(mx_norm * inv_x_norm * _artanh(sqrt_c * x_norm))      # (TM, 1)
    res_norm = t * inv_sqrt_c                                       # ||res|| analytically
    # proj(res) folded into the row scale: proj(res) = beta * mx.
    clamp1 = jnp.where(res_norm > maxnorm,
                       maxnorm * pl.reciprocal(jnp.maximum(res_norm, MIN_NORM),
                                               approx=True),
                       1.0)
    beta = t * inv_mx_norm * inv_sqrt_c * clamp1                    # (TM, 1)
    rn_c = jnp.minimum(res_norm, maxnorm)
    x2 = rn_c * rn_c                                                # ||proj(res)||^2, analytic

    # ---------------- HypLinear: mobius_add(proj(res), hyp_bias) -------------
    mh = jnp.sum(mx * hb, axis=-1, keepdims=True)                   # <mx, hb>
    xy = beta * mh                                                  # <proj(res), hb>
    two_cxy = 2.0 * c * xy
    num_x = 1.0 + two_cxy + cy2                                     # coeff of proj(res)
    num_y = 1.0 - c * x2                                            # coeff of hb
    inv_den = pl.reciprocal(
        jnp.maximum(1.0 + two_cxy + c * x2 * cy2, MIN_NORM), approx=True)
    h = (num_x * beta * inv_den) * mx + (num_y * inv_den) * hb      # (TM, Dout_p)

    # proj(h): clamp folded into the logmap0 scale; norm reused for logmap0.
    h_sq = jnp.sum(h * h, axis=-1, keepdims=True)
    inv_h_norm = jax.lax.rsqrt(jnp.maximum(h_sq, MIN_NORM_SQ))
    h_norm = h_sq * inv_h_norm
    over = h_norm > maxnorm
    p_norm = jnp.minimum(h_norm, maxnorm)
    inv_p_norm = jnp.where(over, inv_maxnorm, inv_h_norm)
    clamp2 = jnp.where(over, maxnorm * inv_h_norm, 1.0)

    # ---------------- HypAct: relu(logmap0) -> expmap0 -> proj ---------------
    gamma = _artanh(sqrt_c * p_norm) * inv_p_norm * inv_sqrt_c * clamp2  # >= 0
    xt = jnp.maximum(gamma * h, 0.0)                                # tangent-space ReLU

    u_sq = jnp.sum(xt * xt, axis=-1, keepdims=True)
    inv_u_norm = jax.lax.rsqrt(jnp.maximum(u_sq, MIN_NORM_SQ))
    u_norm = u_sq * inv_u_norm
    tt = _tanh(sqrt_c * u_norm)                      # ||expmap0(xt)|| == tt / sqrt_c
    out_norm = tt * inv_sqrt_c
    clamp3 = jnp.where(out_norm > maxnorm,
                       maxnorm * pl.reciprocal(jnp.maximum(out_norm, MIN_NORM),
                                               approx=True),
                       1.0)
    o_ref[...] = ((tt * inv_u_norm * inv_sqrt_c * clamp3) * xt).astype(o_ref.dtype)

    # TODO(synk): on v6e/v7x, offload the Dout-wide row reductions (mh/h_sq/u_sq)
    # to the post-matmul-idle MXU as (TM,Dout)x(Dout,1) matvecs.


# ----------------------------------------------------------------------------
# wrapper
# ----------------------------------------------------------------------------
def _round_up(a, b):
    return (a + b - 1) // b * b


def hnn_prepare_params(weight, bias, c, *, dot_dtype=jnp.bfloat16):
    """One-time parameter preprocessing (hoisted out of the per-call path):
    lane-dense zero padding (exact: zero lanes contribute nothing to the
    matmul or norms), MXU dtype cast, hyperbolic bias proj(expmap0(bias)),
    and the grid-invariant scalar c*||hyp_bias||^2."""
    d_out, d_in = weight.shape
    din_p = _round_up(d_in, 128)
    dout_p = _round_up(d_out, 128)
    cf = jnp.float32(c)

    w = weight.astype(jnp.float32)
    if (d_out, d_in) != (dout_p, din_p):
        w = jnp.zeros((dout_p, din_p), jnp.float32).at[:d_out, :d_in].set(w)
    if dot_dtype is not None:
        w = w.astype(dot_dtype)                 # bf16 MXU path by default

    b = bias.astype(jnp.float32).reshape(1, -1)
    if d_out != dout_p:
        b = jnp.zeros((1, dout_p), jnp.float32).at[:, :d_out].set(b)
    hyp_bias = _proj_ref(_expmap0_ref(b, cf), cf)                    # (1, dout_p)
    cy2 = (cf * jnp.sum(hyp_bias * hyp_bias)).reshape(1).astype(jnp.float32)

    return dict(weight=w, hyp_bias=hyp_bias, cy2=cy2,
                c=float(c), d_in=d_in, d_out=d_out)


def hnn_layer_apply(x, params, *, tile_m=256):
    """Apply HNNLayer.forward with pre-prepared params. x: (N, Din)."""
    n, d_in = x.shape
    assert d_in == params["d_in"], (d_in, params["d_in"])
    w = params["weight"]
    hb = params["hyp_bias"]
    cy2 = params["cy2"]
    dout_p, din_p = w.shape
    d_out = params["d_out"]

    # Row tiling: keep >= 2 grid steps when possible so the "parallel" axis can
    # shard across v7x's 2 TensorCores; sweep tile_m up to 512 on v5e/v6e.
    half = _round_up(max(8, -(-n // 2)), 8)
    tm = max(8, min(_round_up(min(tile_m, n), 8), half))
    n_p = _round_up(n, tm)

    x = x.astype(jnp.float32)
    if (n_p, din_p) != (n, d_in):            # skip the pad copy when aligned
        x = jnp.zeros((n_p, din_p), jnp.float32).at[:n, :d_in].set(x)

    # Explicit VMEM budget: single-buffered weight + double-buffered x/out
    # tiles + headroom for the in-kernel (TM, Dout) temporaries.
    vmem_bytes = (w.size * w.dtype.itemsize
                  + 2 * tm * din_p * 4
                  + 2 * tm * dout_p * 4
                  + 4 * tm * dout_p * 4
                  + dout_p * 4
                  + (2 << 20))
    vmem_limit = int(min(max(vmem_bytes, 16 * 1024 * 1024), 64 * 1024 * 1024))

    cost = pl.CostEstimate(
        flops=2 * n_p * din_p * dout_p + 24 * n_p * dout_p,
        transcendentals=10 * n_p,
        bytes_accessed=4 * (n_p * din_p + n_p * dout_p + dout_p)
        + w.size * w.dtype.itemsize,
    )

    kernel = functools.partial(hnn_layer_kernel, c=params["c"])
    out = pl.pallas_call(
        kernel,
        out_shape=jax.ShapeDtypeStruct((n_p, dout_p), jnp.float32),
        grid_spec=pltpu.PrefetchScalarGridSpec(
            num_scalar_prefetch=0,
            grid=(n_p // tm,),
            in_specs=[
                pl.BlockSpec((tm, din_p), lambda i: (i, 0)),
                # grid-invariant blocks: fetched once, single-buffered
                pl.BlockSpec((dout_p, din_p), lambda i: (0, 0),
                             pipeline_mode=pl.Buffered(1)),
                pl.BlockSpec((1, dout_p), lambda i: (0, 0),
                             pipeline_mode=pl.Buffered(1)),
                # grid-invariant scalar c*||hyp_bias||^2 lives in SMEM
                pl.BlockSpec(memory_space=pltpu.MemorySpace.SMEM),
            ],
            out_specs=pl.BlockSpec((tm, dout_p), lambda i: (i, 0)),
        ),
        compiler_params=pltpu.CompilerParams(
            dimension_semantics=("parallel",),
            vmem_limit_bytes=vmem_limit),
        cost_estimate=cost,
    )(x, w, hb, cy2)

    if (n_p, dout_p) != (n, d_out):          # skip the slice copy when aligned
        out = out[:n, :d_out]
    return out


def hnn_layer(x, weight, bias, c, *, tile_m=256, dot_dtype=jnp.bfloat16):
    """Convenience wrapper: HNNLayer forward for x: (N, Din), weight: (Dout, Din)."""
    params = hnn_prepare_params(weight, bias, c, dot_dtype=dot_dtype)
    return hnn_layer_apply(x, params, tile_m=tile_m)


# TODO(synk): for very large Din/Dout (v7x 64 MiB VMEM) add Dout tiling plus a
# K-reduction "arbitrary" grid axis with an f32 VMEM accumulator; the single
# weight block here is sized for moderate feature widths.

if __name__ == "__main__":
    key = jax.random.PRNGKey(0)
    k_x, k_w, k_b = jax.random.split(key, 3)

    # Small, intentionally non-128-aligned shapes to exercise the padding path.
    N, D_IN, D_OUT = 48, 48, 40
    C = 1.0
    cf = jnp.float32(C)

    # Input points on the Poincare ball: small tangent vectors mapped in.
    x_tan = 0.1 * jax.random.normal(k_x, (N, D_IN), dtype=jnp.float32)
    x = _proj_ref(_expmap0_ref(x_tan, cf), cf)

    # HypLinear parameters: xavier_uniform_(gain=sqrt(2)); bias made nonzero
    # here to exercise the mobius_add path (reset_parameters() uses zeros).
    gain = math.sqrt(2.0)
    bound = gain * math.sqrt(6.0 / (D_IN + D_OUT))
    weight = jax.random.uniform(
        k_w, (D_OUT, D_IN), dtype=jnp.float32, minval=-bound, maxval=bound)
    bias = 0.05 * jax.random.normal(k_b, (D_OUT,), dtype=jnp.float32)

    out = jax.block_until_ready(hnn_layer(x, weight, bias, C, tile_m=256))
    ref = jax.block_until_ready(hnn_layer_ref(x, weight, bias, cf))

    assert out.shape == (N, D_OUT)
    assert bool(jnp.all(jnp.isfinite(out)))
    max_err = float(jnp.max(jnp.abs(out - ref)))
    assert bool(jnp.allclose(out, ref, rtol=2e-2, atol=2e-2)), max_err
    print("KERNEL_OK")
</pallas_src>

<mosaic_0001>
module attributes {stable_mosaic.version = 11 : i64} {
  func.func @hnn_layer_kernel(%arg0: i32, %arg1: memref<24x128xf32, #tpu.memory_space<vmem>>, %arg2: memref<128x128xbf16, #tpu.memory_space<vmem>>, %arg3: memref<1x128xf32, #tpu.memory_space<vmem>>, %arg4: memref<1xf32, #tpu.memory_space<smem>>, %arg5: memref<24x128xf32, #tpu.memory_space<vmem>>) attributes {dimension_semantics = [#tpu.dimension_semantics<parallel>], iteration_bounds = array<i64: 2>, scalar_prefetch = 0 : i64, scratch_operands = 0 : i64, tpu.core_type = #tpu.core_type<tc>, window_params = [{transform_indices = @transform_0, window_bounds = array<i64: 24, 128>}, {pipeline_mode = #tpu.pipeline_mode<synchronous>, transform_indices = @transform_1, window_bounds = array<i64: 128, 128>}, {pipeline_mode = #tpu.pipeline_mode<synchronous>, transform_indices = @transform_2, window_bounds = array<i64: 1, 128>}, {transform_indices = @transform_3, window_bounds = array<i64: 1>}, {transform_indices = @transform_4, window_bounds = array<i64: 24, 128>}]} {
    %c0 = arith.constant 0 : index
    %c0_0 = arith.constant 0 : index
    %0 = vector.load %arg1[%c0, %c0_0] : memref<24x128xf32, #tpu.memory_space<vmem>>, vector<24x128xf32>
    %c0_1 = arith.constant 0 : index
    %c0_2 = arith.constant 0 : index
    %1 = vector.load %arg2[%c0_1, %c0_2] : memref<128x128xbf16, #tpu.memory_space<vmem>>, vector<128x128xbf16>
    %c0_3 = arith.constant 0 : index
    %c0_4 = arith.constant 0 : index
    %2 = vector.load %arg3[%c0_3, %c0_4] : memref<1x128xf32, #tpu.memory_space<vmem>>, vector<1x128xf32>
    %c0_5 = arith.constant 0 : index
    %3 = memref.load %arg4[%c0_5] : memref<1xf32, #tpu.memory_space<smem>>
    %4 = arith.mulf %0, %0 : vector<24x128xf32>
    %cst = arith.constant dense<0.000000e+00> : vector<24xf32>
    %5 = vector.multi_reduction <add>, %4, %cst [1] : vector<24x128xf32> to vector<24xf32>
    %6 = vector.shape_cast %5 : vector<24xf32> to vector<24x1xf32>
    %cst_6 = arith.constant 1.000000e-30 : f32
    %7 = vector.broadcast %cst_6 : f32 to vector<24x1xf32>
    %8 = arith.maximumf %6, %7 : vector<24x1xf32>
    %9 = math.rsqrt %8 : vector<24x1xf32>
    %10 = arith.mulf %6, %9 : vector<24x1xf32>
    %11 = arith.truncf %0 : vector<24x128xf32> to vector<24x128xbf16>
    %cst_7 = arith.constant dense<0.000000e+00> : vector<24x128xf32>
    %12 = tpu.matmul %11, %1, %cst_7 {dimension_numbers = #tpu.dot_dimension_numbers<[1], [1], [0], [0], [0, 0, 1, 0], [], []>} : vector<24x128xbf16>, vector<128x128xbf16>, vector<24x128xf32> -> vector<24x128xf32>
    %13 = arith.mulf %12, %12 : vector<24x128xf32>
    %cst_8 = arith.constant dense<0.000000e+00> : vector<24xf32>
    %14 = vector.multi_reduction <add>, %13, %cst_8 [1] : vector<24x128xf32> to vector<24xf32>
    %15 = vector.shape_cast %14 : vector<24xf32> to vector<24x1xf32>
    %cst_9 = arith.constant 1.000000e-30 : f32
    %16 = vector.broadcast %cst_9 : f32 to vector<24x1xf32>
    %17 = arith.maximumf %15, %16 : vector<24x1xf32>
    %18 = math.rsqrt %17 : vector<24x1xf32>
    %19 = arith.mulf %15, %18 : vector<24x1xf32>
    %20 = arith.mulf %19, %9 : vector<24x1xf32>
    %cst_10 = arith.constant 1.000000e+00 : f32
    %21 = vector.broadcast %cst_10 : f32 to vector<24x1xf32>
    %22 = arith.mulf %21, %10 : vector<24x1xf32>
    %cst_11 = arith.constant -0.99999988 : f32
    %cst_12 = arith.constant 0.99999988 : f32
    %23 = vector.broadcast %cst_11 : f32 to vector<24x1xf32>
    %24 = arith.maximumf %23, %22 : vector<24x1xf32>
    %25 = vector.broadcast %cst_12 : f32 to vector<24x1xf32>
    %26 = arith.minimumf %25, %24 : vector<24x1xf32>
    %cst_13 = arith.constant 1.000000e+00 : f32
    %27 = vector.broadcast %cst_13 : f32 to vector<24x1xf32>
    %28 = arith.addf %27, %26 : vector<24x1xf32>
    %29 = math.log %28 : vector<24x1xf32>
    %cst_14 = arith.constant 1.000000e+00 : f32
    %30 = vector.broadcast %cst_14 : f32 to vector<24x1xf32>
    %31 = arith.subf %30, %26 : vector<24x1xf32>
    %32 = math.log %31 : vector<24x1xf32>
    %33 = arith.subf %29, %32 : vector<24x1xf32>
    %cst_15 = arith.constant 5.000000e-01 : f32
    %34 = vector.broadcast %cst_15 : f32 to vector<24x1xf32>
    %35 = arith.mulf %34, %33 : vector<24x1xf32>
    %36 = arith.mulf %20, %35 : vector<24x1xf32>
    %cst_16 = arith.constant -1.500000e+01 : f32
    %cst_17 = arith.constant 1.500000e+01 : f32
    %37 = vector.broadcast %cst_16 : f32 to vector<24x1xf32>
    %38 = arith.maximumf %37, %36 : vector<24x1xf32>
    %39 = vector.broadcast %cst_17 : f32 to vector<24x1xf32>
    %40 = arith.minimumf %39, %38 : vector<24x1xf32>
    %41 = math.tanh %40 : vector<24x1xf32>
    %cst_18 = arith.constant 1.000000e+00 : f32
    %42 = vector.broadcast %cst_18 : f32 to vector<24x1xf32>
    %43 = arith.mulf %41, %42 : vector<24x1xf32>
    %cst_19 = arith.constant 0.995999991 : f32
    %44 = vector.broadcast %cst_19 : f32 to vector<24x1xf32>
    %45 = arith.cmpf ogt, %43, %44 : vector<24x1xf32>
    %cst_20 = arith.constant 1.000000e-15 : f32
    %46 = vector.broadcast %cst_20 : f32 to vector<24x1xf32>
    %47 = arith.maximumf %43, %46 : vector<24x1xf32>
    %48 = tpu.reciprocal %47 {approx = true} : vector<24x1xf32> -> vector<24x1xf32>
    %cst_21 = arith.constant 0.995999991 : f32
    %49 = vector.broadcast %cst_21 : f32 to vector<24x1xf32>
    %50 = arith.mulf %49, %48 : vector<24x1xf32>
    %cst_22 = arith.constant 1.000000e+00 : f32
    %51 = vector.broadcast %cst_22 : f32 to vector<24x1xf32>
    %52 = arith.select %45, %50, %51 : vector<24x1xi1>, vector<24x1xf32>
    %53 = arith.mulf %41, %18 : vector<24x1xf32>
    %cst_23 = arith.constant 1.000000e+00 : f32
    %54 = vector.broadcast %cst_23 : f32 to vector<24x1xf32>
    %55 = arith.mulf %53, %54 : vector<24x1xf32>
    %56 = arith.mulf %55, %52 : vector<24x1xf32>
    %cst_24 = arith.constant 0.995999991 : f32
    %57 = vector.broadcast %cst_24 : f32 to vector<24x1xf32>
    %58 = arith.minimumf %43, %57 : vector<24x1xf32>
    %59 = arith.mulf %58, %58 : vector<24x1xf32>
    %60 = vector.broadcast %2 : vector<1x128xf32> to vector<24x128xf32>
    %61 = arith.mulf %12, %60 : vector<24x128xf32>
    %cst_25 = arith.constant dense<0.000000e+00> : vector<24xf32>
    %62 = vector.multi_reduction <add>, %61, %cst_25 [1] : vector<24x128xf32> to vector<24xf32>
    %63 = vector.shape_cast %62 : vector<24xf32> to vector<24x1xf32>
    %64 = arith.mulf %56, %63 : vector<24x1xf32>
    %cst_26 = arith.constant 2.000000e+00 : f32
    %65 = vector.broadcast %cst_26 : f32 to vector<24x1xf32>
    %66 = arith.mulf %65, %64 : vector<24x1xf32>
    %cst_27 = arith.constant 1.000000e+00 : f32
    %67 = vector.broadcast %cst_27 : f32 to vector<24x1xf32>
    %68 = arith.addf %67, %66 : vector<24x1xf32>
    %69 = vector.broadcast %3 : f32 to vector<24x1xf32>
    %70 = arith.addf %68, %69 : vector<24x1xf32>
    %cst_28 = arith.constant 1.000000e+00 : f32
    %71 = vector.broadcast %cst_28 : f32 to vector<24x1xf32>
    %72 = arith.mulf %71, %59 : vector<24x1xf32>
    %cst_29 = arith.constant 1.000000e+00 : f32
    %73 = vector.broadcast %cst_29 : f32 to vector<24x1xf32>
    %74 = arith.subf %73, %72 : vector<24x1xf32>
    %cst_30 = arith.constant 1.000000e+00 : f32
    %75 = vector.broadcast %cst_30 : f32 to vector<24x1xf32>
    %76 = arith.addf %75, %66 : vector<24x1xf32>
    %cst_31 = arith.constant 1.000000e+00 : f32
    %77 = vector.broadcast %cst_31 : f32 to vector<24x1xf32>
    %78 = arith.mulf %77, %59 : vector<24x1xf32>
    %79 = vector.broadcast %3 : f32 to vector<24x1xf32>
    %80 = arith.mulf %78, %79 : vector<24x1xf32>
    %81 = arith.addf %76, %80 : vector<24x1xf32>
    %cst_32 = arith.constant 1.000000e-15 : f32
    %82 = vector.broadcast %cst_32 : f32 to vector<24x1xf32>
    %83 = arith.maximumf %81, %82 : vector<24x1xf32>
    %84 = tpu.reciprocal %83 {approx = true} : vector<24x1xf32> -> vector<24x1xf32>
    %85 = arith.mulf %70, %56 : vector<24x1xf32>
    %86 = arith.mulf %85, %84 : vector<24x1xf32>
    %87 = vector.broadcast %86 : vector<24x1xf32> to vector<24x128xf32>
    %88 = arith.mulf %87, %12 : vector<24x128xf32>
    %89 = arith.mulf %74, %84 : vector<24x1xf32>
    %90 = vector.broadcast %89 : vector<24x1xf32> to vector<24x128xf32>
    %91 = vector.broadcast %2 : vector<1x128xf32> to vector<24x128xf32>
    %92 = arith.mulf %90, %91 : vector<24x128xf32>
    %93 = arith.addf %88, %92 : vector<24x128xf32>
    %94 = arith.mulf %93, %93 : vector<24x128xf32>
    %cst_33 = arith.constant dense<0.000000e+00> : vector<24xf32>
    %95 = vector.multi_reduction <add>, %94, %cst_33 [1] : vector<24x128xf32> to vector<24xf32>
    %96 = vector.shape_cast %95 : vector<24xf32> to vector<24x1xf32>
    %cst_34 = arith.constant 1.000000e-30 : f32
    %97 = vector.broadcast %cst_34 : f32 to vector<24x1xf32>
    %98 = arith.maximumf %96, %97 : vector<24x1xf32>
    %99 = math.rsqrt %98 : vector<24x1xf32>
    %100 = arith.mulf %96, %99 : vector<24x1xf32>
    %cst_35 = arith.constant 0.995999991 : f32
    %101 = vector.broadcast %cst_35 : f32 to vector<24x1xf32>
    %102 = arith.cmpf ogt, %100, %101 : vector<24x1xf32>
    %cst_36 = arith.constant 0.995999991 : f32
    %103 = vector.broadcast %cst_36 : f32 to vector<24x1xf32>
    %104 = arith.minimumf %100, %103 : vector<24x1xf32>
    %cst_37 = arith.constant 1.00401604 : f32
    %105 = vector.broadcast %cst_37 : f32 to vector<24x1xf32>
    %106 = arith.select %102, %105, %99 : vector<24x1xi1>, vector<24x1xf32>
    %cst_38 = arith.constant 0.995999991 : f32
    %107 = vector.broadcast %cst_38 : f32 to vector<24x1xf32>
    %108 = arith.mulf %107, %99 : vector<24x1xf32>
    %cst_39 = arith.constant 1.000000e+00 : f32
    %109 = vector.broadcast %cst_39 : f32 to vector<24x1xf32>
    %110 = arith.select %102, %108, %109 : vector<24x1xi1>, vector<24x1xf32>
    %cst_40 = arith.constant 1.000000e+00 : f32
    %111 = vector.broadcast %cst_40 : f32 to vector<24x1xf32>
    %112 = arith.mulf %111, %104 : vector<24x1xf32>
    %cst_41 = arith.constant -0.99999988 : f32
    %cst_42 = arith.constant 0.99999988 : f32
    %113 = vector.broadcast %cst_41 : f32 to vector<24x1xf32>
    %114 = arith.maximumf %113, %112 : vector<24x1xf32>
    %115 = vector.broadcast %cst_42 : f32 to vector<24x1xf32>
    %116 = arith.minimumf %115, %114 : vector<24x1xf32>
    %cst_43 = arith.constant 1.000000e+00 : f32
    %117 = vector.broadcast %cst_43 : f32 to vector<24x1xf32>
    %118 = arith.addf %117, %116 : vector<24x1xf32>
    %119 = math.log %118 : vector<24x1xf32>
    %cst_44 = arith.constant 1.000000e+00 : f32
    %120 = vector.broadcast %cst_44 : f32 to vector<24x1xf32>
    %121 = arith.subf %120, %116 : vector<24x1xf32>
    %122 = math.log %121 : vector<24x1xf32>
    %123 = arith.subf %119, %122 : vector<24x1xf32>
    %cst_45 = arith.constant 5.000000e-01 : f32
    %124 = vector.broadcast %cst_45 : f32 to vector<24x1xf32>
    %125 = arith.mulf %124, %123 : vector<24x1xf32>
    %126 = arith.mulf %125, %106 : vector<24x1xf32>
    %cst_46 = arith.constant 1.000000e+00 : f32
    %127 = vector.broadcast %cst_46 : f32 to vector<24x1xf32>
    %128 = arith.mulf %126, %127 : vector<24x1xf32>
    %129 = arith.mulf %128, %110 : vector<24x1xf32>
    %130 = vector.broadcast %129 : vector<24x1xf32> to vector<24x128xf32>
    %131 = arith.mulf %130, %93 : vector<24x128xf32>
    %cst_47 = arith.constant 0.000000e+00 : f32
    %132 = vector.broadcast %cst_47 : f32 to vector<24x128xf32>
    %133 = arith.maximumf %131, %132 : vector<24x128xf32>
    %134 = arith.mulf %133, %133 : vector<24x128xf32>
    %cst_48 = arith.constant dense<0.000000e+00> : vector<24xf32>
    %135 = vector.multi_reduction <add>, %134, %cst_48 [1] : vector<24x128xf32> to vector<24xf32>
    %136 = vector.shape_cast %135 : vector<24xf32> to vector<24x1xf32>
    %cst_49 = arith.constant 1.000000e-30 : f32
    %137 = vector.broadcast %cst_49 : f32 to vector<24x1xf32>
    %138 = arith.maximumf %136, %137 : vector<24x1xf32>
    %139 = math.rsqrt %138 : vector<24x1xf32>
    %140 = arith.mulf %136, %139 : vector<24x1xf32>
    %cst_50 = arith.constant 1.000000e+00 : f32
    %141 = vector.broadcast %cst_50 : f32 to vector<24x1xf32>
    %142 = arith.mulf %141, %140 : vector<24x1xf32>
    %cst_51 = arith.constant -1.500000e+01 : f32
    %cst_52 = arith.constant 1.500000e+01 : f32
    %143 = vector.broadcast %cst_51 : f32 to vector<24x1xf32>
    %144 = arith.maximumf %143, %142 : vector<24x1xf32>
    %145 = vector.broadcast %cst_52 : f32 to vector<24x1xf32>
    %146 = arith.minimumf %145, %144 : vector<24x1xf32>
    %147 = math.tanh %146 : vector<24x1xf32>
    %cst_53 = arith.constant 1.000000e+00 : f32
    %148 = vector.broadcast %cst_53 : f32 to vector<24x1xf32>
    %149 = arith.mulf %147, %148 : vector<24x1xf32>
    %cst_54 = arith.constant 0.995999991 : f32
    %150 = vector.broadcast %cst_54 : f32 to vector<24x1xf32>
    %151 = arith.cmpf ogt, %149, %150 : vector<24x1xf32>
    %cst_55 = arith.constant 1.000000e-15 : f32
    %152 = vector.broadcast %cst_55 : f32 to vector<24x1xf32>
    %153 = arith.maximumf %149, %152 : vector<24x1xf32>
    %154 = tpu.reciprocal %153 {approx = true} : vector<24x1xf32> -> vector<24x1xf32>
    %cst_56 = arith.constant 0.995999991 : f32
    %155 = vector.broadcast %cst_56 : f32 to vector<24x1xf32>
    %156 = arith.mulf %155, %154 : vector<24x1xf32>
    %cst_57 = arith.constant 1.000000e+00 : f32
    %157 = vector.broadcast %cst_57 : f32 to vector<24x1xf32>
    %158 = arith.select %151, %156, %157 : vector<24x1xi1>, vector<24x1xf32>
    %159 = arith.mulf %147, %139 : vector<24x1xf32>
    %cst_58 = arith.constant 1.000000e+00 : f32
    %160 = vector.broadcast %cst_58 : f32 to vector<24x1xf32>
    %161 = arith.mulf %159, %160 : vector<24x1xf32>
    %162 = arith.mulf %161, %158 : vector<24x1xf32>
    %163 = vector.broadcast %162 : vector<24x1xf32> to vector<24x128xf32>
    %164 = arith.mulf %163, %133 : vector<24x128xf32>
    %c0_59 = arith.constant 0 : index
    %c0_60 = arith.constant 0 : index
    %165 = vector.load %arg5[%c0_59, %c0_60] : memref<24x128xf32, #tpu.memory_space<vmem>>, vector<24x128xf32>
    tpu.vector_store %arg5[%c0_59, %c0_60], %164 {strides = array<i32>} : memref<24x128xf32, #tpu.memory_space<vmem>>, vector<24x128xf32>,
    return
  }
  func.func @transform_0(%arg0: i32) -> (i32, i32) {
    %c0_i32 = arith.constant 0 : i32
    %c0_i32_0 = arith.constant 0 : i32
    return %arg0, %c0_i32 : i32, i32
  }
  func.func @transform_1(%arg0: i32) -> (i32, i32) {
    %c0_i32 = arith.constant 0 : i32
    %c0_i32_0 = arith.constant 0 : i32
    %c0_i32_1 = arith.constant 0 : i32
    return %c0_i32, %c0_i32_0 : i32, i32
  }
  func.func @transform_2(%arg0: i32) -> (i32, i32) {
    %c0_i32 = arith.constant 0 : i32
    %c0_i32_0 = arith.constant 0 : i32
    %c0_i32_1 = arith.constant 0 : i32
    return %c0_i32, %c0_i32_0 : i32, i32
  }
  func.func @transform_3(%arg0: i32) -> i32 {
    %c0_i32 = arith.constant 0 : i32
    %c0_i32_0 = arith.constant 0 : i32
    return %c0_i32 : i32
  }
  func.func @transform_4(%arg0: i32) -> (i32, i32) {
    %c0_i32 = arith.constant 0 : i32
    %c0_i32_0 = arith.constant 0 : i32
    return %arg0, %c0_i32 : i32, i32
  }
}

</mosaic_0001>

<bundles_post_ra>
// kernel: tpu_custom_call.1
= control target key start
LH: loop header
LB: loop body
LE: loop exit
PB: predicated region body
PF: predicated region fallthrough
CT: control target
= control target key end

     0   :  { %s1379_s0 = inlined_call_operand.hbm [shape: f32[48,128], index: 0, kind: input, shape index: {}]   ;;  %s1380_s1 = inlined_call_operand.hbm [shape: bf16[128,128], index: 1, kind: input, shape index: {}]   ;;  %s1381_s2 = inlined_call_operand.vmem [shape: f32[1,128], index: 2, kind: input, shape index: {}]   ;;  %s1382_s3 = inlined_call_operand.<no memory space> [shape: f32[1], index: 3, kind: input, shape index: {}]   ;;  %s1383_s4 = inlined_call_operand.hbm [shape: f32[48,128], index: 4, kind: output, shape index: {}]  }
   0x1   :  { %9 = sst [smem:[#allocation2]] %s1382_s3 }
   0x2   :  { %10 = vsyncpa [#allocation4], 0 }
   0x3   :  { %12 = vsyncpa [#allocation4 + $0x1], 0 }
   0x4   :  { %13 = vsyncpa [#allocation7], 0 }
   0x5   :  { %14 = vsyncpa [#allocation5], 0 }
   0x6   :  { %16 = vsyncpa [#allocation5 + $0x1], 0  ;;  %s1130_s17 = smov 0   ;;  %s1132_s18 = smov 0  }
   0x7   :  { %s1134_s19 = smov 0   ;;  %s1136_s20 = smov 0  }
   0x8 LB: > { %s1151_s3 = sadd.s32 4294967295, %s1091_s20   ;;  %s749_s21 = sadd.s32 4294967294, %s1091_s20   ;;  %s1091_s20 = sphi %s1136_s20, %s1403_s20   ;;  %s1087_s19 = sphi %s1134_s19, %s1402_s19   ;;  %s1083_s18 = sphi %s1132_s18, %s1401_s18   ;;  %s1079_s17 = sphi %s1130_s17, %s1400_s17  }
   0x9   : > { %p42_p0 = scmp.ne.s32.totalorder %s1083_s18, %s1079_s17  ;;  %p1384_p1 = scmp.eq.s32.totalorder %s1151_s3, 0 }
   0xa   : > { %p135_p3 = scmp.eq.s32.totalorder %s749_s21, 1  ;;  %p750_p5 = scmp.ge.s32.totalorder %s1091_s20, 1 }
   0xb   : > { %p1160_p4 = por %p1384_p1, %p42_p0  ;;  %p142_p7 = scmp.lt.s32.totalorder %s1091_s20, 3 }
   0xc   : > { %p1165_p6 = por %p135_p3, %p42_p0  ;;  %s1093_s25 = smov [#allocation6]  }
   0xd   : > { %s1387_s22 = scalar_select %p1160_p4, 1, 0 }
   0xe   : > { %s1388_s23 = scalar_select %p1165_p6, 1, 0 }
   0xf   : > { %p1170_p8 = pnand %p750_p5, %p142_p7  ;;  %s154_s26 = sshll.u32 %s1093_s25, 4  ;;  %s1174_s26 = int_to_ptr.vmem [resolvable:$true] %s154_s26 }
  0x10   : > { %s1186_s28 = sadd.s32 1, %s1091_s20   ;;  %s29_s29 = sadd.s32 1, %s1087_s19 }
  0x11   : > { %s1389_s24 = scalar_select %p1170_p8, 1, 0 }
  0x12   : > { %p822_p9 = pneg %p1170_p8  ;;  %s26_s30 = ssub.s32 %s1091_s20, %s1186_s28 }
  0x13   : > { %s963_s7 = scalar_lea.hbm %s1380_s1, 1024 }
  0x14   : > { %p1181_p11 = pnand %p822_p9, %p1384_p1  ;;  %p964_p12 = scmp.ne.s32.totalorder %s1380_s1, %s963_s7 }
  0x15   : > { %p970_p5 = scmp.lt.u32.totalorder %s963_s7, %s1380_s1 }
  0x16   : > { %p965_p13 = pneg %p1181_p11 }
  0x18   : > { %p966_p0 = pnand %p965_p13, %p964_p12 }
  0x1a   : > { %p967_p3 = pneg %p966_p0 }
  0x1c   : > { %p972_p7 = pnand %p970_p5, %p967_p3 }
  0x1e   : > { %975 = shalt.err (!%p972_p7)
}
  0x1f   : > { %s976_s12 = scalar_lea.vmem %s1174_s26, 1024  ;;  %p984_p2 = scmp.lt.s32.totalorder %s1174_s26, %s1174_s26 }
  0x20   : > { %p977_p9 = scmp.ne.s32.totalorder %s1174_s26, %s976_s12  ;;  %p985_p6 = scmp.lt.s32.totalorder %s976_s12, %s976_s12 }
  0x22   : > { %p979_p10 = pnand %p977_p9, %p965_p13  ;;  %p986_p4 = por %p985_p6, %p984_p2 }
  0x24   : > { %p980_p1 = pneg %p979_p10 }
  0x26   : > { %p987_p8 = pnand %p986_p4, %p980_p1 }
  0x28   : > { %990 = shalt.err (!%p987_p8)
}
  0x29   : > { %s1094_s13 = smov 64   ;;  %s1095_s14 = smov 4  }
  0x2a   : > { %825 = dma.hbm_to_vmem [thread:$0]  (!%p1181_p11), %s1380_s1, 1024, %s1174_s26, [#allocation7], %s1094_s13, %s1094_s13, %s1095_s14  }
  0x2b   : > { %p27_p2 = scmp.eq.s32.totalorder %s26_s30, 0  ;;  %p36_p1 = scmp.ne.s32.totalorder %s1087_s19, %s1083_s18 }
  0x2c   : > { %p37_p4 = scmp.eq.s32.totalorder %s1091_s20, 0  ;;  %p835_p6 = scmp.lt.s32.totalorder %s1091_s20, 2 }
  0x2d   : > { %s1217_s21 = scalar_select %p27_p2, %s1087_s19, %s29_s29  }
  0x2e   : > { %p38_p8 = por %p37_p4, %p36_p1  ;;  %p1391_p10 = scmp.eq.s32.totalorder %s1151_s3, 1 }
  0x2f   : > { %s174_s5 = sand.u32 1, %s1087_s19   ;;  %s780_s6 = smul.u32 384, %s1091_s20 }
  0x30   : > { %p1221_p12 = por %p1391_p10, %p36_p1  ;;  %s812_s7 = smul.u32 24, %s174_s5 }
  0x31   : > { %s1230_s9 = scalar_lea.hbm %s1379_s0, %s780_s6  ;;  %p1232_p11 = pnand %p835_p6, %p38_p8 }
  0x32   : > { %s178_s29 = scalar_lea.vmem [#allocation3], %s812_s7  ;;  %s1238_s10 = scalar_lea.sflag [#allocation4], %s174_s5 }
  0x33   : > { %s185_s30 = sshll.u32 %s178_s29, 4  ;;  %s991_s11 = scalar_lea.hbm %s1230_s9, 384  ;;  %s1236_s30 = int_to_ptr.vmem [resolvable:$true] %s185_s30 }
  0x34   : > { %p992_p13 = scmp.ne.s32.totalorder %s1230_s9, %s991_s11  ;;  %p993_p0 = pneg %p1232_p11 }
  0x35   : > { %s996_s14 = scalar_lea.hbm %s1379_s0, 768  ;;  %p997_p7 = scmp.lt.u32.totalorder %s1230_s9, %s1379_s0 }
  0x36   : > { %p994_p3 = pnand %p993_p0, %p992_p13  ;;  %p998_p9 = scmp.lt.u32.totalorder %s996_s14, %s991_s11 }
  0x37   : > { %p1000_p1 = scmp.lt.u32.totalorder %s991_s11, %s1230_s9 }
  0x38   : > { %p995_p5 = pneg %p994_p3  ;;  %p999_p2 = por %p998_p9, %p997_p7 }
  0x3a   : > { %p1001_p4 = por %p1000_p1, %p999_p2 }
  0x3c   : > { %p1002_p6 = pnand %p1001_p4, %p995_p5 }
  0x3e   : > { %1005 = shalt.err (!%p1002_p6)
}
  0x3f   : > { %s1006_s5 = scalar_lea.vmem %s1236_s30, 384  ;;  %s1096_s6 = smov [#allocation3]  }
  0x40   : > { %p1007_p8 = scmp.ne.s32.totalorder %s1236_s30, %s1006_s5  ;;  %s1011_s7 = sshll.u32 %s1096_s6, 4  ;;  %s1012_s7 = int_to_ptr.vmem [resolvable:$false] %s1011_s7 }
  0x41   : > { %s1013_s27 = scalar_lea.vmem %s1012_s7, 768  ;;  %p1014_p3 = scmp.lt.s32.totalorder %s1236_s30, %s1012_s7 }
  0x42   : > { %p1009_p10 = pnand %p1007_p8, %p993_p0  ;;  %p1015_p7 = scmp.lt.s32.totalorder %s1013_s27, %s1006_s5 }
  0x44   : > { %p1010_p13 = pneg %p1009_p10  ;;  %p1016_p9 = por %p1015_p7, %p1014_p3 }
  0x46   : > { %p1017_p2 = pnand %p1016_p9, %p1010_p13 }
  0x48   : > { %1020 = shalt.err (!%p1017_p2)
}
  0x49   : > { %s1097_s8 = smov 128   ;;  %s1098_s29 = smov 8  }
  0x4a   : > { %829 = dma.hbm_to_vmem [thread:$0]  (!%p1232_p11), %s1230_s9, 384, %s1236_s30, %s1238_s10, %s1097_s8, %s1097_s8, %s1098_s29  }
  0x4b   : > { %p1394_p0 = scmp.ne.s32.totalorder %s1389_s24, 0 }
  0x4c   : > { %s1269_s11 = sand.u32 (!%p1394_p0), 1, %s1083_s18   ;;  %p1395_p5 = scmp.ne.s32.totalorder (!%p1394_p0), %s1387_s22, 0 }
  0x4d   : > { %197 = sbr.rel (%p1394_p0) target bundleno = 990 (0x3de), region = 36  ;;  %s200_s13 = scalar_lea.sflag (!%p1394_p0), [#allocation4], %s1269_s11 }
  0x4e   : > { %s813_s12 = smul.u32 (!%p1394_p0), 24, %s1269_s11 }
  0x50   : > { %s203_s14 = scalar_lea.vmem (!%p1394_p0), [#allocation3], %s813_s12 }
  0x54   : > { %1066 = dma.done.wait (%p1395_p5), %s200_s13, 384  }
  0x55   : > { %1068 = vsyncadd (%p1395_p5), %s200_s13, 4294966912  ;;  %p1396_p11 = scmp.eq.s32.totalorder %s1151_s3, 0 }
  0x57   : > { %1070 = dma.done.wait (%p1396_p11), [#allocation7], 1024   ;;  %p1397_p1 = pmov %p1396_p11 }
  0x58   : > { %v877_v0 = vld [vmem:[#allocation6] sm:$0xff]   ;;  %v878_v1 = vld [vmem:[#allocation6 + $0x8] sm:$0xff]   ;;  %v879_v2 = vld [vmem:[#allocation6 + $0x10] sm:$0xff]   ;;  %s255_s9 = sld [smem:[#allocation2]]  ;;  %s781_s26 = smul.u32 384, %s1151_s3 }
  0x59   : > { %1072 = vsyncadd (%p1397_p1), [#allocation7], 4294966272  ;;  %792 = vmatprep.subr.bf16.mxu0 %v877_v0  ;;  %v235_v3 = vld [vmem:[%s203_s14] sm:$0xff]  ;;  %v236_v4 = vld [vmem:[%s203_s14 + $0x8] sm:$0xff]  ;;  %s231_s30 = scalar_lea.vmem [#allocation8], %s813_s12  ;;  %s653_s3 = scalar_lea.sflag [#allocation5], %s1269_s11 }
  0x5a   : > { %793 = vmatpush3.bf16.xpose.msra.mxu0 %v877_v0  ;;  %v237_v5 = vld [vmem:[%s203_s14 + $0x10] sm:$0xff]  ;;  %v274_v6 = vpack.c.bf16 %v236_v4, %v235_v3  ;;  %v256_v7 = vmul.f32 %v235_v3, %v235_v3  ;;  %v257_v9 = vmul.f32 %v236_v4, %v236_v4  ;;  %v882_v12 = vld [vmem:[#allocation6 + $0x28] sm:$0xff]   ;;  %v883_v13 = vld [vmem:[#allocation6 + $0x30] sm:$0xff]   ;;  %s666_s10 = sshll.u32 %s231_s30, 4  ;;  %s1333_s5 = scalar_lea.hbm %s1383_s4, %s781_s26  ;;  %s1335_s10 = int_to_ptr.vmem [resolvable:$true] %s666_s10 }
  0x5b   : > { %794 = vmatprep.subr.bf16.mxu0 %v878_v1  ;;  %v258_v8 = vmul.f32 %v237_v5, %v237_v5  ;;  %v880_v10 = vld [vmem:[#allocation6 + $0x18] sm:$0xff]   ;;  %v881_v11 = vld [vmem:[#allocation6 + $0x20] sm:$0xff]   ;;  %v275_v15 = vpack.c.bf16 %v237_v5, %v237_v5  ;;  %v1296_v22 = vld [vmem:[%s1381_s2] ss:$0 sm:$0xff]  ;;  %s1021_s6 = scalar_lea.vmem %s1335_s10, 384  ;;  %s1099_s7 = smov [#allocation8]  }
  0x5c   : > { %808 = vmatprep.mubr.bf16.mxu0 %v274_v6  ;;  %259 = vadd.xlane.f32.xlu0 %v256_v7  ;;  %v884_v14 = vld [vmem:[#allocation6 + $0x38] sm:$0xff]   ;;  %p1022_p4 = scmp.ne.s32.totalorder %s1335_s10, %s1021_s6  ;;  %s1025_s27 = sshll.u32 %s1099_s7, 4  ;;  %s1026_s27 = int_to_ptr.vmem [resolvable:$false] %s1025_s27 }
  0x5d   : > { %263 = vadd.xlane.f32.xlu1 %v258_v8  ;;  %s1027_s8 = scalar_lea.vmem %s1026_s27, 768  ;;  %p1028_p10 = scmp.lt.s32.totalorder %s1335_s10, %s1026_s27 }
  0x5e   : > { %p1023_p6 = pnand %p1022_p4, %p1221_p12  ;;  %p1029_p13 = scmp.lt.s32.totalorder %s1027_s8, %s1021_s6 }
  0x60   : > { %261 = vadd.xlane.f32.xlu0 %v257_v9  ;;  %p1024_p8 = pneg %p1023_p6  ;;  %p1030_p3 = por %p1029_p13, %p1028_p10 }
  0x62   : > { %795 = vmatpush3.bf16.xpose.msra.mxu0 %v878_v1  ;;  %p1031_p7 = pnand %p1030_p3, %p1024_p8 }
  0x63   : > { %796 = vmatprep.subr.bf16.mxu0 %v879_v2 }
  0x6a   : > { %797 = vmatpush3.bf16.xpose.msra.mxu0 %v879_v2 }
  0x6b   : > { %798 = vmatprep.subr.bf16.mxu0 %v880_v10 }
  0x72   : > { %799 = vmatpush3.bf16.xpose.msra.mxu0 %v880_v10 }
  0x73   : > { %800 = vmatprep.subr.bf16.mxu0 %v881_v11 }
  0x7a   : > { %801 = vmatpush3.bf16.xpose.msra.mxu0 %v881_v11 }
  0x7b   : > { %802 = vmatprep.subr.bf16.mxu0 %v882_v12 }
  0x82   : > { %803 = vmatpush3.bf16.xpose.msra.mxu0 %v882_v12 }
  0x83   : > { %804 = vmatprep.subr.bf16.mxu0 %v883_v13 }
  0x8a   : > { %805 = vmatpush3.bf16.xpose.msra.mxu0 %v883_v13 }
  0x8b   : > { %806 = vmatprep.subr.bf16.mxu0 %v884_v14 }
  0x92   : > { %807 = vmatpush3.bf16.xpose.msra.mxu0 %v884_v14 }
  0x99   : > { %809 = vmatmul.mubr.bf16.vlgmr.msra.gmra.mrb[0].mxu0 %v275_v15 }
  0xe9   : > { %v260_v27 = vpop.xlane.xlu0 %259 }
  0xea   : > { %v265_v29 = vmax.f32 %v260_v27, 1e-30  ;;  %v264_v30 = vpop.xlane.xlu1 %263 }
  0xeb   : > { %v267_v32 = vmax.f32 %v264_v30, 1e-30 }
  0xec   : > { %885 = vrsqrt.f32 %v265_v29 }
  0xed   : > { %v262_v28 = vpop.xlane.xlu0 %261 }
  0xee   : > { %v266_v31 = vmax.f32 %v262_v28, 1e-30 }
  0xf0   : > { %887 = vrsqrt.f32 %v266_v31 }
  0xf1   : > { %889 = vrsqrt.f32 %v267_v32 }
  0xf6   : > { %v886_v33 = vpop.eup %885 }
  0xf7   : > { %v271_v35 = vmul.f32 %v886_v33, %v260_v27 }
  0xf9   : > { %v764_v38 = vclamps-f32 %v271_v35, 0.9999999 }
  0xfa   : > { %v888_v34 = vpop.eup %887 }
  0xfb   : > { %v890_v36 = vpop.eup %889  ;;  %v272_v37 = vmul.f32 %v888_v34, %v262_v28  ;;  %v399_v41 = vadd.f32 1.0, %v764_v38  ;;  %v408_v43 = vsub.f32 1.0, %v764_v38 }
  0xfc   : > { %v273_v39 = vmul.f32 %v890_v36, %v264_v30 }
  0xfd   : > { %v765_v40 = vclamps-f32 %v272_v37, 0.9999999  ;;  %891 = vlog2.f32 %v399_v41 }
  0xfe   : > { %v766_v42 = vclamps-f32 %v273_v39, 0.9999999  ;;  %893 = vlog2.f32 %v408_v43 }
  0xff   : > { %v400_v44 = vadd.f32 1.0, %v765_v40  ;;  %v409_v45 = vsub.f32 1.0, %v765_v40 }
 0x100   : > { %v401_v46 = vadd.f32 1.0, %v766_v42  ;;  %v410_v47 = vsub.f32 1.0, %v766_v42 }
 0x101   : > { %895 = vlog2.f32 %v400_v44 }
 0x102   : > { %897 = vlog2.f32 %v409_v45 }
 0x103   : > { %899 = vlog2.f32 %v401_v46 }
 0x104   : > { %901 = vlog2.f32 %v410_v47 }
 0x107   : > { %v892_v52 = vpop.eup %891 }
 0x108   : > { %v894_v54 = vpop.eup %893  ;;  %v403_v59 = vmul.f32 0.6931472, %v892_v52 }
 0x109   : > { %v412_v60 = vmul.f32 0.6931472, %v894_v54 }
 0x10b   : > { %v896_v56 = vpop.eup %895  ;;  %v417_v2 = vsub.f32 %v403_v59, %v412_v60 }
 0x10c   : > { %v898_v57 = vpop.eup %897  ;;  %v405_v62 = vmul.f32 0.6931472, %v896_v56 }
 0x10d   : > { %v900_v58 = vpop.eup %899  ;;  %v414_v63 = vmul.f32 0.6931472, %v898_v57  ;;  %v420_v8 = vmul.f32 0.5, %v417_v2 }
 0x10e   : > { %v902_v61 = vpop.eup %901  ;;  %v407_v0 = vmul.f32 0.6931472, %v900_v58 }
 0x10f   : > { %v416_v1 = vmul.f32 0.6931472, %v902_v61  ;;  %v418_v5 = vsub.f32 %v405_v62, %v414_v63 }
 0x111   : > { %v419_v10 = vsub.f32 %v407_v0, %v416_v1  ;;  %v421_v13 = vmul.f32 0.5, %v418_v5 }
 0x16c   : > { %v1283_v16 = vpop.f32.mrb[0].mxu0 }
 0x16d   : > { %v1285_v17 = vpop.f32.mrb[1].mxu0  ;;  %v374_v23 = vmul.f32 %v1283_v16, %v1283_v16  ;;  %v470_v26 = vmul.f32 %v1283_v16, %v1296_v22 }
 0x16e   : > { %v811_v18 = vpop.f32.mrb[2].mxu0  ;;  %v372_v19 = vmul.f32 %v1285_v17, %v1285_v17  ;;  %v468_v24 = vmul.f32 %v1296_v22, %v1285_v17 }
 0x16f   : > { %v1289_v20 = vpop.f32.mrb[3].mxu0 }
 0x170   : > { %375 = vadd.xlane.f32.xlu1 %v372_v19  ;;  %v373_v21 = vmul.f32 %v1289_v20, %v1289_v20  ;;  %v469_v25 = vmul.f32 %v1296_v22, %v1289_v20 }
 0x172   : > { %377 = vadd.xlane.f32.xlu0 %v373_v21  ;;  %v422_v21 = vmul.f32 0.5, %v419_v10 }
 0x174   : > { %379 = vadd.xlane.f32.xlu1 %v374_v23 }
 0x176   : > { %471 = vadd.xlane.f32.xlu0 %v468_v24 }
 0x178   : > { %473 = vadd.xlane.f32.xlu1 %v469_v25 }
 0x17a   : > { %475 = vadd.xlane.f32.xlu0 %v470_v26 }
 0x1fd   : > { %v376_v48 = vpop.xlane.xlu1 %375 }
 0x1fe   : > { %v381_v49 = vmax.f32 %v376_v48, 1e-30 }
 0x1ff   : > { %v378_v50 = vpop.xlane.xlu0 %377 }
 0x200   : > { %903 = vrsqrt.f32 %v381_v49  ;;  %v382_v51 = vmax.f32 %v378_v50, 1e-30 }
 0x201   : > { %v380_v53 = vpop.xlane.xlu1 %379 }
 0x202   : > { %905 = vrsqrt.f32 %v382_v51  ;;  %v383_v55 = vmax.f32 %v380_v53, 1e-30  ;;  %v486_v51 = vstv %s255_s9 }
 0x203   : > { %v472_v39 = vpop.xlane.xlu0 %471 }
 0x204   : > { %907 = vrsqrt.f32 %v383_v55 }
 0x205   : > { %v474_v52 = vpop.xlane.xlu1 %473 }
 0x207   : > { %v476_v59 = vpop.xlane.xlu0 %475 }
 0x20a   : > { %v904_v3 = vpop.eup %903 }
 0x20b   : > { %v387_v4 = vmul.f32 %v904_v3, %v376_v48 }
 0x20c   : > { %v906_v6 = vpop.eup %905 }
 0x20d   : > { %v390_v7 = vmul.f32 %v886_v33, %v387_v4  ;;  %v388_v9 = vmul.f32 %v906_v6, %v378_v50 }
 0x20e   : > { %v908_v11 = vpop.eup %907 }
 0x20f   : > { %v423_v12 = vmul.f32 %v420_v8, %v390_v7  ;;  %v391_v14 = vmul.f32 %v888_v34, %v388_v9  ;;  %v389_v15 = vmul.f32 %v908_v11, %v380_v53 }
 0x211   : > { %v767_v18 = vclamps-f32 %v423_v12, 15.0  ;;  %v424_v19 = vmul.f32 %v421_v13, %v391_v14  ;;  %v392_v23 = vmul.f32 %v890_v36, %v389_v15 }
 0x213   : > { %909 = vtanh.f32 %v767_v18  ;;  %v768_v24 = vclamps-f32 %v424_v19, 15.0  ;;  %v425_v25 = vmul.f32 %v422_v21, %v392_v23 }
 0x215   : > { %911 = vtanh.f32 %v768_v24  ;;  %v769_v26 = vclamps-f32 %v425_v25, 15.0 }
 0x217   : > { %913 = vtanh.f32 %v769_v26 }
 0x21d   : > { %v910_v27 = vpop.eup %909 }
 0x21e   : > { %v438_v28 = vmax.f32 %v910_v27, 1e-15  ;;  %v456_v35 = vmin.f32 %v910_v27, 0.996  ;;  %vm435_vm0 = vcmp.gt.f32.partialorder %v910_v27, 0.996  ;;  %v450_v37 = vmul.f32 %v910_v27, %v904_v3 }
 0x21f   : > { %v912_v29 = vpop.eup %911 }
 0x220   : > { %915 = vrcp.f32 %v438_v28  ;;  %v439_v30 = vmax.f32 %v912_v29, 1e-15  ;;  %vm436_vm1 = vcmp.gt.f32.partialorder %v912_v29, 0.996  ;;  %v451_v43 = vmul.f32 %v912_v29, %v906_v6 }
 0x221   : > { %v914_v31 = vpop.eup %913  ;;  %v457_v44 = vmin.f32 %v912_v29, 0.996  ;;  %v459_v45 = vmul.f32 %v456_v35, %v456_v35 }
 0x222   : > { %917 = vrcp.f32 %v439_v30  ;;  %v440_v32 = vmax.f32 %v914_v31, 1e-15  ;;  %vm437_vm2 = vcmp.gt.f32.partialorder %v914_v31, 0.996  ;;  %v452_v50 = vmul.f32 %v914_v31, %v908_v11 }
 0x223   : > { %v458_v54 = vmin.f32 %v914_v31, 0.996  ;;  %v460_v56 = vmul.f32 %v457_v44, %v457_v44  ;;  %v493_v60 = vmul.f32 %v486_v51, %v459_v45  ;;  %v490_v15 = vsub.f32 1.0, %v459_v45 }
 0x224   : > { %919 = vrcp.f32 %v440_v32 }
 0x225   : > { %v461_v0 = vmul.f32 %v458_v54, %v458_v54  ;;  %v494_v3 = vmul.f32 %v486_v51, %v460_v56  ;;  %v491_v25 = vsub.f32 1.0, %v460_v56 }
 0x227   : > { %v495_v7 = vmul.f32 %v486_v51, %v461_v0  ;;  %v492_v32 = vsub.f32 1.0, %v461_v0 }
 0x22a   : > { %v916_v33 = vpop.eup %915 }
 0x22b   : > { %v444_v34 = vmul.f32 0.996, %v916_v33 }
 0x22c   : > { %v918_v36 = vpop.eup %917 }
 0x22d   : > { %v447_v38 = vsel %vm435_vm0, %v444_v34, 1.0  ;;  %v445_v40 = vmul.f32 0.996, %v918_v36 }
 0x22e   : > { %v920_v41 = vpop.eup %919  ;;  %v453_v42 = vmul.f32 %v450_v37, %v447_v38 }
 0x22f   : > { %v448_v46 = vsel %vm436_vm1, %v445_v40, 1.0  ;;  %v446_v47 = vmul.f32 0.996, %v920_v41 }
 0x230   : > { %v477_v48 = vmul.f32 %v472_v39, %v453_v42  ;;  %v454_v49 = vmul.f32 %v451_v43, %v448_v46 }
 0x231   : > { %v449_v53 = vsel %vm437_vm2, %v446_v47, 1.0 }
 0x232   : > { %v480_v55 = vmul.f32 2.0, %v477_v48  ;;  %v478_v57 = vmul.f32 %v474_v52, %v454_v49  ;;  %v455_v58 = vmul.f32 %v452_v50, %v449_v53 }
 0x234   : > { %v483_v61 = vadd.f32 1.0, %v480_v55  ;;  %v481_v62 = vmul.f32 2.0, %v478_v57  ;;  %v479_v63 = vmul.f32 %v476_v59, %v455_v58 }
 0x236   : > { %v496_v1 = vadd.f32 %v493_v60, %v483_v61  ;;  %v484_v2 = vadd.f32 1.0, %v481_v62  ;;  %v482_v4 = vmul.f32 2.0, %v479_v63  ;;  %v487_v12 = vadd.f32 %v486_v51, %v483_v61 }
 0x238   : > { %v499_v5 = vmax.f32 %v496_v1, 1e-15  ;;  %v497_v6 = vadd.f32 %v494_v3, %v484_v2  ;;  %v485_v8 = vadd.f32 1.0, %v482_v4  ;;  %v488_v13 = vadd.f32 %v486_v51, %v484_v2 }
 0x239   : > { %v505_v14 = vmul.f32 %v487_v12, %v453_v42 }
 0x23a   : > { %921 = vrcp.f32 %v499_v5  ;;  %v500_v9 = vmax.f32 %v497_v6, 1e-15  ;;  %v498_v10 = vadd.f32 %v495_v7, %v485_v8  ;;  %v489_v19 = vadd.f32 %v486_v51, %v485_v8 }
 0x23b   : > { %v506_v23 = vmul.f32 %v488_v13, %v454_v49 }
 0x23c   : > { %923 = vrcp.f32 %v500_v9  ;;  %v501_v11 = vmax.f32 %v498_v10, 1e-15  ;;  %v507_v31 = vmul.f32 %v489_v19, %v455_v58 }
 0x23e   : > { %925 = vrcp.f32 %v501_v11 }
 0x244   : > { %v922_v18 = vpop.eup %921 }
 0x245   : > { %v508_v21 = vmul.f32 %v922_v18, %v505_v14  ;;  %v514_v24 = vmul.f32 %v922_v18, %v490_v15 }
 0x246   : > { %v924_v26 = vpop.eup %923 }
 0x247   : > { %v509_v27 = vmul.f32 %v924_v26, %v506_v23  ;;  %v511_v28 = vmul.f32 %v508_v21, %v1285_v17  ;;  %v517_v29 = vmul.f32 %v1296_v22, %v514_v24  ;;  %v515_v30 = vmul.f32 %v924_v26, %v491_v25 }
 0x248   : > { %v926_v33 = vpop.eup %925 }
 0x249   : > { %v1308_v34 = vadd.f32 %v517_v29, %v511_v28  ;;  %v512_v35 = vmul.f32 %v509_v27, %v1289_v20  ;;  %v518_v36 = vmul.f32 %v1296_v22, %v515_v30  ;;  %v510_v37 = vmul.f32 %v926_v33, %v507_v31 }
 0x24a   : > { %v516_v38 = vmul.f32 %v926_v33, %v492_v32 }
 0x24b   : > { %v523_v39 = vmul.f32 %v1308_v34, %v1308_v34  ;;  %v1314_v40 = vadd.f32 %v518_v36, %v512_v35  ;;  %v513_v17 = vmul.f32 %v1283_v16, %v510_v37 }
 0x24c   : > { %v519_v41 = vmul.f32 %v1296_v22, %v516_v38 }
 0x24d   : > { %526 = vadd.xlane.f32.xlu1 %v523_v39  ;;  %v524_v42 = vmul.f32 %v1314_v40, %v1314_v40 }
 0x24e   : > { %v1320_v43 = vadd.f32 %v519_v41, %v513_v17 }
 0x24f   : > { %528 = vadd.xlane.f32.xlu0 %v524_v42 }
 0x250   : > { %v525_v20 = vmul.f32 %v1320_v43, %v1320_v43 }
 0x252   : > { %530 = vadd.xlane.f32.xlu1 %v525_v20 }
 0x2da   : > { %v527_v44 = vpop.xlane.xlu1 %526 }
 0x2db   : > { %v532_v45 = vmax.f32 %v527_v44, 1e-30 }
 0x2dc   : > { %v529_v46 = vpop.xlane.xlu0 %528 }
 0x2dd   : > { %927 = vrsqrt.f32 %v532_v45  ;;  %v533_v47 = vmax.f32 %v529_v46, 1e-30 }
 0x2df   : > { %929 = vrsqrt.f32 %v533_v47  ;;  %v531_v16 = vpop.xlane.xlu1 %530 }
 0x2e0   : > { %v534_v48 = vmax.f32 %v531_v16, 1e-30 }
 0x2e2   : > { %931 = vrsqrt.f32 %v534_v48 }
 0x2e7   : > { %v928_v22 = vpop.eup %927 }
 0x2e8   : > { %v538_v49 = vmul.f32 %v928_v22, %v527_v44  ;;  %v550_v12 = vmul.f32 0.996, %v928_v22 }
 0x2e9   : > { %v930_v50 = vpop.eup %929 }
 0x2ea   : > { %v544_v51 = vmin.f32 %v538_v49, 0.996  ;;  %v539_v52 = vmul.f32 %v930_v50, %v529_v46  ;;  %vm541_vm3 = vcmp.gt.f32.partialorder %v538_v49, 0.996  ;;  %v551_v21 = vmul.f32 0.996, %v930_v50 }
 0x2eb   : > { %v547_v19 = vsel %vm541_vm3, 1.004016, %v928_v22  ;;  %v553_v26 = vsel %vm541_vm3, %v550_v12, 1.0 }
 0x2ec   : > { %v932_v53 = vpop.eup %931  ;;  %v771_v54 = vclamps-f32 %v544_v51, 0.9999999  ;;  %v545_v55 = vmin.f32 %v539_v52, 0.996  ;;  %vm542_vm4 = vcmp.gt.f32.partialorder %v539_v52, 0.996 }
 0x2ed   : > { %v540_v56 = vmul.f32 %v932_v53, %v531_v16  ;;  %v548_v27 = vsel %vm542_vm4, 1.004016, %v930_v50  ;;  %v552_v31 = vmul.f32 0.996, %v932_v53  ;;  %v554_v32 = vsel %vm542_vm4, %v551_v21, 1.0 }
 0x2ee   : > { %v562_v57 = vadd.f32 1.0, %v771_v54  ;;  %v571_v58 = vsub.f32 1.0, %v771_v54  ;;  %v772_v59 = vclamps-f32 %v545_v55, 0.9999999 }
 0x2ef   : > { %v546_v60 = vmin.f32 %v540_v56, 0.996  ;;  %vm543_vm5 = vcmp.gt.f32.partialorder %v540_v56, 0.996 }
 0x2f0   : > { %933 = vlog2.f32 %v562_v57  ;;  %v563_v61 = vadd.f32 1.0, %v772_v59  ;;  %v572_v62 = vsub.f32 1.0, %v772_v59  ;;  %v549_v36 = vsel %vm543_vm5, 1.004016, %v932_v53 }
 0x2f1   : > { %935 = vlog2.f32 %v571_v58  ;;  %v773_v63 = vclamps-f32 %v546_v60, 0.9999999  ;;  %v555_v39 = vsel %vm543_vm5, %v552_v31, 1.0 }
 0x2f2   : > { %937 = vlog2.f32 %v563_v61 }
 0x2f3   : > { %939 = vlog2.f32 %v572_v62  ;;  %v564_v0 = vadd.f32 1.0, %v773_v63  ;;  %v573_v1 = vsub.f32 1.0, %v773_v63 }
 0x2f5   : > { %941 = vlog2.f32 %v564_v0 }
 0x2f6   : > { %943 = vlog2.f32 %v573_v1 }
 0x2fa   : > { %v934_v2 = vpop.eup %933 }
 0x2fb   : > { %v936_v3 = vpop.eup %935  ;;  %v566_v4 = vmul.f32 0.6931472, %v934_v2 }
 0x2fc   : > { %v938_v5 = vpop.eup %937  ;;  %v575_v6 = vmul.f32 0.6931472, %v936_v3 }
 0x2fd   : > { %v940_v7 = vpop.eup %939  ;;  %v568_v8 = vmul.f32 0.6931472, %v938_v5 }
 0x2fe   : > { %v580_v9 = vsub.f32 %v566_v4, %v575_v6  ;;  %v577_v10 = vmul.f32 0.6931472, %v940_v7 }
 0x2ff   : > { %v942_v11 = vpop.eup %941 }
 0x300   : > { %v944_v13 = vpop.eup %943  ;;  %v583_v14 = vmul.f32 0.5, %v580_v9  ;;  %v581_v15 = vsub.f32 %v568_v8, %v577_v10  ;;  %v570_v18 = vmul.f32 0.6931472, %v942_v11 }
 0x301   : > { %v579_v23 = vmul.f32 0.6931472, %v944_v13 }
 0x302   : > { %v586_v24 = vmul.f32 %v583_v14, %v547_v19  ;;  %v584_v25 = vmul.f32 0.5, %v581_v15 }
 0x303   : > { %v582_v28 = vsub.f32 %v570_v18, %v579_v23 }
 0x304   : > { %v589_v29 = vmul.f32 %v586_v24, %v553_v26  ;;  %v587_v30 = vmul.f32 %v584_v25, %v548_v27 }
 0x305   : > { %v585_v33 = vmul.f32 0.5, %v582_v28 }
 0x306   : > { %v590_v35 = vmul.f32 %v587_v30, %v554_v32  ;;  %v592_v37 = vmul.f32 %v589_v29, %v1308_v34 }
 0x307   : > { %v588_v38 = vmul.f32 %v585_v33, %v549_v36 }
 0x308   : > { %v595_v17 = vmax.f32 %v592_v37, 0.0  ;;  %v593_v41 = vmul.f32 %v590_v35, %v1314_v40 }
 0x309   : > { %v591_v42 = vmul.f32 %v588_v38, %v555_v39 }
 0x30a   : > { %v598_v20 = vmul.f32 %v595_v17, %v595_v17  ;;  %v596_v44 = vmax.f32 %v593_v41, 0.0 }
 0x30b   : > { %v594_v45 = vmul.f32 %v591_v42, %v1320_v43 }
 0x30c   : > { %601 = vadd.xlane.f32.xlu0 %v598_v20  ;;  %v599_v46 = vmul.f32 %v596_v44, %v596_v44 }
 0x30d   : > { %v597_v47 = vmax.f32 %v594_v45, 0.0 }
 0x30e   : > { %603 = vadd.xlane.f32.xlu1 %v599_v46 }
 0x30f   : > { %v600_v16 = vmul.f32 %v597_v47, %v597_v47 }
 0x311   : > { %605 = vadd.xlane.f32.xlu0 %v600_v16 }
 0x399   : > { %v602_v48 = vpop.xlane.xlu0 %601 }
 0x39a   : > { %v607_v22 = vmax.f32 %v602_v48, 1e-30 }
 0x39b   : > { %v604_v49 = vpop.xlane.xlu1 %603 }
 0x39c   : > { %945 = vrsqrt.f32 %v607_v22  ;;  %v608_v34 = vmax.f32 %v604_v49, 1e-30 }
 0x39e   : > { %947 = vrsqrt.f32 %v608_v34  ;;  %v606_v50 = vpop.xlane.xlu0 %605 }
 0x39f   : > { %v609_v51 = vmax.f32 %v606_v50, 1e-30 }
 0x3a1   : > { %949 = vrsqrt.f32 %v609_v51 }
 0x3a6   : > { %v946_v40 = vpop.eup %945 }
 0x3a7   : > { %v613_v52 = vmul.f32 %v946_v40, %v602_v48 }
 0x3a8   : > { %v948_v53 = vpop.eup %947 }
 0x3a9   : > { %v774_v54 = vclamps-f32 %v613_v52, 15.0  ;;  %v614_v43 = vmul.f32 %v948_v53, %v604_v49 }
 0x3ab   : > { %v950_v55 = vpop.eup %949  ;;  %951 = vtanh.f32 %v774_v54  ;;  %v775_v56 = vclamps-f32 %v614_v43, 15.0 }
 0x3ac   : > { %v615_v57 = vmul.f32 %v950_v55, %v606_v50 }
 0x3ad   : > { %953 = vtanh.f32 %v775_v56 }
 0x3ae   : > { %v776_v58 = vclamps-f32 %v615_v57, 15.0 }
 0x3b0   : > { %955 = vtanh.f32 %v776_v58 }
 0x3b5   : > { %v952_v59 = vpop.eup %951 }
 0x3b6   : > { %v628_v60 = vmax.f32 %v952_v59, 1e-15  ;;  %vm625_vm6 = vcmp.gt.f32.partialorder %v952_v59, 0.996  ;;  %v640_v4 = vmul.f32 %v952_v59, %v946_v40 }
 0x3b7   : > { %v954_v61 = vpop.eup %953 }
 0x3b8   : > { %957 = vrcp.f32 %v628_v60  ;;  %v629_v62 = vmax.f32 %v954_v61, 1e-15  ;;  %vm626_vm7 = vcmp.gt.f32.partialorder %v954_v61, 0.996  ;;  %v641_v8 = vmul.f32 %v954_v61, %v948_v53 }
 0x3ba   : > { %v956_v63 = vpop.eup %955  ;;  %959 = vrcp.f32 %v629_v62 }
 0x3bb   : > { %v630_v0 = vmax.f32 %v956_v63, 1e-15  ;;  %vm627_vm8 = vcmp.gt.f32.partialorder %v956_v63, 0.996  ;;  %v642_v14 = vmul.f32 %v956_v63, %v950_v55 }
 0x3bd   : > { %961 = vrcp.f32 %v630_v0 }
 0x3c2   : > { %v958_v1 = vpop.eup %957 }
 0x3c3   : > { %v634_v2 = vmul.f32 0.996, %v958_v1 }
 0x3c4   : > { %v960_v3 = vpop.eup %959 }
 0x3c5   : > { %v637_v5 = vsel %vm625_vm6, %v634_v2, 1.0  ;;  %v635_v6 = vmul.f32 0.996, %v960_v3 }
 0x3c6   : > { %v643_v7 = vmul.f32 %v640_v4, %v637_v5 }
 0x3c7   : > { %v962_v9 = vpop.eup %961  ;;  %v638_v10 = vsel %vm626_vm7, %v635_v6, 1.0 }
 0x3c8   : > { %v646_v11 = vmul.f32 %v643_v7, %v595_v17  ;;  %v644_v12 = vmul.f32 %v641_v8, %v638_v10  ;;  %v636_v13 = vmul.f32 0.996, %v962_v9 }
 0x3ca   : > { %v647_v15 = vmul.f32 %v644_v12, %v596_v44  ;;  %v639_v18 = vsel %vm627_vm8, %v636_v13, 1.0  ;;  %649 = vst [vmem:[%s231_s30] sm:$0xff] %v646_v11 }
 0x3cb   : > { %v645_v19 = vmul.f32 %v642_v14, %v639_v18 }
 0x3cc   : > { %650 = vst [vmem:[%s231_s30 + $0x8] sm:$0xff] %v647_v15 }
 0x3cd   : > { %v648_v21 = vmul.f32 %v645_v19, %v597_v47 }
 0x3cf   : > { %651 = vst [vmem:[%s231_s30 + $0x10] sm:$0xff] %v648_v21 }
 0x3d0   : > { %1034 = shalt.err (!%p1031_p7)
}
 0x3d1   : > { %s1035_s29 = scalar_lea.hbm %s1333_s5, 384  ;;  %s1039_s14 = scalar_lea.hbm %s1383_s4, 768 }
 0x3d2   : > { %p1036_p9 = scmp.ne.s32.totalorder %s1333_s5, %s1035_s29  ;;  %p1040_p5 = scmp.lt.u32.totalorder %s1333_s5, %s1383_s4 }
 0x3d3   : > { %p1041_p11 = scmp.lt.u32.totalorder %s1039_s14, %s1035_s29  ;;  %p1043_p4 = scmp.lt.u32.totalorder %s1035_s29, %s1333_s5 }
 0x3d4   : > { %p1037_p2 = pnand %p1036_p9, %p1221_p12 }
 0x3d5   : > { %p1042_p1 = por %p1041_p11, %p1040_p5 }
 0x3d6   : > { %p1038_p0 = pneg %p1037_p2 }
 0x3d7   : > { %p1044_p6 = por %p1043_p4, %p1042_p1 }
 0x3d9   : > { %p1045_p8 = pnand %p1044_p6, %p1038_p0 }
 0x3db   : > { %1048 = shalt.err (!%p1045_p8)
}
 0x3dc   : > { %s1100_s9 = smov 128   ;;  %s1101_s26 = smov 8  }
 0x3dd   : > { %820 = dma.vmem_to_hbm [thread:$0]  (%p1221_p12), %s1335_s10, 384, %s1333_s5, %s653_s3, %s1100_s9, %s1100_s9, %s1101_s26  }
 0x3de PF: > { %s681_s30 = sand.u32 1, %s1079_s17   ;;  %p1398_p10 = scmp.ne.s32.totalorder %s1388_s23, 0 }
 0x3df   : > { %p1399_p13 = scmp.ge.s32.totalorder %s1091_s20, 2  ;;  %s682_s15 = scalar_lea.sflag [#allocation5], %s681_s30 }
 0x3e1   : > { %p831_p3 = pnand %p1399_p13, %p1398_p10 }
 0x3e3   : > { %1074 = dma.done.wait (!%p831_p3), %s682_s15, 384  }
 0x3e4   : > { %1076 = vsyncadd (!%p831_p3), %s682_s15, 4294966912  ;;  %p19_p7 = scmp.ge.s32.totalorder %s1186_s28, 4   ;;  %s1400_s17 = smov %s1083_s18 }
 0x3e5   : > { %s1401_s18 = smov %s1087_s19  ;;  %s1402_s19 = smov %s1217_s21 }
 0x3e6   : > { %s1403_s20 = smov %s1186_s28  ;;  %21 = sbr.rel (!%p19_p7) target bundleno = 8 (0x8), region = 85 }
 0x3ed   :  { %687 = vsyncpa [#allocation4], 1 }
 0x3ee   :  { %689 = vsyncpa [#allocation4 + $0x1], 1 }
 0x3ef   :  { %690 = vsyncpa [#allocation7], 1 }
 0x3f0   :  { %691 = vsyncpa [#allocation5], 1 }
 0x3f1   :  { %693 = vsyncpa [#allocation5 + $0x1], 1 }

</bundles_post_ra>
